<compile_context>
chip_gen: v6e
topology: v6e:2x2x1
jax: 0.10.0
libtpu: 0.0.40
codegen_flags: <defaults>
</compile_context>

<pallas_src>
import functools

import jax
import jax.numpy as jnp
from jax.experimental import pallas as pl
from jax.experimental.pallas import tpu as pltpu


def additive_attention_kernel(x_ref, w1_ref, b1_ref, w2_ref, b2_ref,
                              ctx_ref, wts_ref, scores_ref,
                              *, s_pad, mxu_bf16):
    n = pl.program_id(1)
    n_last = pl.num_programs(1) - 1
    Bt, S, H = x_ref.shape
    Hn = w1_ref.shape[1]

    x = x_ref[...]                                   # (Bt, S, H), native dtype
    x2 = x.reshape(Bt * S, H)                        # merge leading dims (layout-free)

    # fc1 column slab: MXU matmul with f32 accumulation, bias + tanh in f32.
    if mxu_bf16:
        lhs = x2.astype(jnp.bfloat16)
        rhs = w1_ref[...].astype(jnp.bfloat16)
    else:
        lhs = x2
        rhs = w1_ref[...]
    h = jnp.tanh(
        jnp.dot(lhs, rhs, preferred_element_type=jnp.float32)
        + b1_ref[...].astype(jnp.float32)
    )                                                # (Bt*S, Hn) f32

    # fc2 contribution from this slab as a VPU multiply + lane reduce.
    w2_row = w2_ref[...].astype(jnp.float32)         # (1, Hn)
    partial = jnp.sum(h.reshape(Bt, S, Hn) * w2_row, axis=-1)   # (Bt, S)

    @pl.when(n == 0)
    def _():
        scores_ref[...] = jnp.zeros_like(scores_ref)

    scores_ref[...] += partial

    @pl.when(n == n_last)
    def _():
        scores = scores_ref[...] + b2_ref[0]         # scalar bias from SMEM

        # Softmax over the sequence axis (lane reduce).
        m = jnp.max(scores, axis=-1, keepdims=True)  # (Bt, 1)
        e = jnp.exp(scores - m)                      # (Bt, S)
        denom = jnp.sum(e, axis=-1, keepdims=True)   # (Bt, 1)
        w = e * pl.reciprocal(denom, approx=False)   # (Bt, S) f32

        # Lane-dense weights store (pad to a multiple of 128 lanes with zeros).
        if s_pad > S:
            w_out = jnp.concatenate(
                [w, jnp.zeros((Bt, s_pad - S), w.dtype)], axis=-1)
        else:
            w_out = w
        wts_ref[...] = w_out.astype(wts_ref.dtype)

        # Context: weighted sum over S (sublane reduce; H stays lane-dense).
        xw = x.astype(jnp.float32) * w.reshape(Bt, S, 1)
        ctx_ref[...] = jnp.sum(xw, axis=1).astype(ctx_ref.dtype)


def _choose_hn(H, max_hn=512):
    """fc1-output slab width: divides H and is a multiple of 128 (or H itself)."""
    if H <= max_hn:
        return H
    for hn in range(max_hn, 0, -128):
        if H % hn == 0:
            return hn
    return H                                         # no 128-multiple divisor


def _choose_batch_tile(B, S, H, hn, x_bytes,
                       target_rows=512, vmem_budget=40 << 20):
    """Batch-tile size Bt.

    * Sized so the x tile (double-buffered), the f32 intermediates and the
      streamed weight slabs fit a VMEM budget chosen for v7x's 64 MiB per TC.
    * Bt is a multiple of 8 (second-to-last dim of the output blocks) unless a
      single tile covers the whole batch.
    * When B >= 16, keep >= 2 batch steps so the "parallel" axis can shard
      across v7x's two TensorCores.
    """
    slab_bytes = 2 * hn * (H + 2) * x_bytes                      # w1/b1/w2, dbl-buffered
    per_row = S * (H * (2 * x_bytes + 4) + hn * 4)               # x (dbl-buf) + xw f32 + h f32
    cap = max(1, int((vmem_budget - slab_bytes) // max(per_row, 1)))
    bt = min(max(1, -(-target_rows // S)), cap)                  # ~target_rows of MXU M
    if B >= 16:
        bt = min(bt, B // 2)                                     # >= 2 batch steps
    if bt >= B:
        return B                                                 # one tile covers batch
    return max(8, (bt // 8) * 8)                                 # sublane-aligned Bt


def additive_attention(inputs, w1, b1, w2, b2, *, mxu_bf16=None):
    """inputs: (B, S, H); w1: (H, H) (in,out); b1: (H,); w2: (H, 1); b2: (1,)."""
    B, S, H = inputs.shape
    x_bytes = jnp.dtype(inputs.dtype).itemsize
    if mxu_bf16 is None:
        mxu_bf16 = inputs.dtype == jnp.bfloat16

    Hn = _choose_hn(H)
    num_n = H // Hn
    Bt = _choose_batch_tile(B, S, H, Hn, x_bytes)
    num_b = pl.cdiv(B, Bt)
    B_pad = num_b * Bt
    S_pad = -(-S // 128) * 128                        # lane-dense weights output

    inputs_p = inputs
    if B_pad != B:
        inputs_p = jnp.pad(inputs, ((0, B_pad - B), (0, 0), (0, 0)))

    b1_2d = b1.reshape(1, H)
    w2_row = w2.reshape(1, H)                         # row form for the VPU reduce
    b2_1d = b2.reshape(1)

    # Explicit scoped-VMEM limit sized from the actual tile footprint.
    est = (2 * Bt * S * H * x_bytes                   # x tile, double-buffered
           + 2 * (H + 2) * Hn * x_bytes               # w1/b1/w2 slabs, double-buffered
           + Bt * S * Hn * 4                          # h slab (f32)
           + Bt * S * H * 4                           # xw (f32)
           + Bt * S * 4                               # scores scratch
           + 2 * (Bt * H * x_bytes + Bt * S_pad * 4)) # outputs, double-buffered
    vmem_limit = int(max(32 << 20, min(int(est * 1.5) + (4 << 20), 64 << 20)))

    grid_spec = pltpu.PrefetchScalarGridSpec(
        num_scalar_prefetch=0,
        grid=(num_b, num_n),
        in_specs=[
            pl.BlockSpec((Bt, S, H), lambda g, n: (g, 0, 0)),        # inputs (resident over n)
            pl.BlockSpec((H, Hn), lambda g, n: (0, n)),              # fc1 weight slab
            pl.BlockSpec((1, Hn), lambda g, n: (0, n)),              # fc1 bias slab
            pl.BlockSpec((1, Hn), lambda g, n: (0, n)),              # fc2 weight slab (row)
            pl.BlockSpec(memory_space=pltpu.MemorySpace.SMEM),       # fc2 bias (scalar)
        ],
        out_specs=[
            pl.BlockSpec((Bt, H), lambda g, n: (g, 0)),              # context (B_pad, H)
            pl.BlockSpec((Bt, S_pad), lambda g, n: (g, 0)),          # weights (B_pad, S_pad)
        ],
        scratch_shapes=[pltpu.VMEM((Bt, S), jnp.float32)],           # score accumulator
    )

    context, weights2d = pl.pallas_call(
        functools.partial(additive_attention_kernel,
                          s_pad=S_pad, mxu_bf16=bool(mxu_bf16)),
        out_shape=(
            jax.ShapeDtypeStruct((B_pad, H), inputs.dtype),
            jax.ShapeDtypeStruct((B_pad, S_pad), jnp.float32),
        ),
        grid_spec=grid_spec,
        compiler_params=pltpu.CompilerParams(
            dimension_semantics=("parallel", "arbitrary"),
            vmem_limit_bytes=vmem_limit),
    )(inputs_p, w1, b1_2d, w2_row, b2_1d)

    context = context[:B]
    weights = weights2d[:B, :S].reshape(B, S, 1)
    return context, weights


def _reference(inputs, w1, b1, w2, b2):
    # Plain-JAX reference mirroring the PyTorch forward.
    h = jnp.tanh(inputs @ w1 + b1)                 # (B, S, H)
    scores = h @ w2 + b2                           # (B, S, 1)
    weights = jax.nn.softmax(scores, axis=1)       # softmax over seq dim
    context = jnp.sum(inputs * weights, axis=1)    # (B, H)
    return context, weights


if __name__ == "__main__":
    B, S, H = 2, 8, 32
    key = jax.random.PRNGKey(0)
    k_x, k_w1, k_b1, k_w2, k_b2 = jax.random.split(key, 5)

    inputs = jax.random.normal(k_x, (B, S, H), dtype=jnp.float32)

    # Parameters stored as (in, out), i.e. transpose of PyTorch's (out, in).
    bound1 = 1.0 / (H ** 0.5)
    w1 = jax.random.uniform(k_w1, (H, H), jnp.float32, -bound1, bound1)
    b1 = jax.random.uniform(k_b1, (H,), jnp.float32, -bound1, bound1)
    w2 = jax.random.uniform(k_w2, (H, 1), jnp.float32, -bound1, bound1)
    b2 = jax.random.uniform(k_b2, (1,), jnp.float32, -bound1, bound1)

    ctx_ref, wts_ref = _reference(inputs, w1, b1, w2, b2)

    # Exact f32-operand path (default for f32 inputs): tight tolerances.
    context, weights = additive_attention(inputs, w1, b1, w2, b2)
    jax.block_until_ready((context, weights))
    assert jnp.allclose(context, ctx_ref, atol=1e-4, rtol=1e-4)
    assert jnp.allclose(weights, wts_ref, atol=1e-5, rtol=1e-4)

    # bf16 MXU-operand fast path (v6e/v7x): f32 accumulation, looser tolerances.
    ctx_bf, wts_bf = additive_attention(inputs, w1, b1, w2, b2, mxu_bf16=True)
    jax.block_until_ready((ctx_bf, wts_bf))
    assert jnp.allclose(ctx_bf, ctx_ref, atol=3e-2, rtol=3e-2)
    assert jnp.allclose(wts_bf, wts_ref, atol=3e-2, rtol=3e-2)

    print("KERNEL_OK")
</pallas_src>

<mosaic_0001>
module attributes {stable_mosaic.version = 11 : i64} {
  func.func @additive_attention_kernel(%arg0: i32, %arg1: i32, %arg2: memref<2x8x32xf32, #tpu.memory_space<vmem>>, %arg3: memref<32x32xf32, #tpu.memory_space<vmem>>, %arg4: memref<1x32xf32, #tpu.memory_space<vmem>>, %arg5: memref<1x32xf32, #tpu.memory_space<vmem>>, %arg6: memref<1xf32, #tpu.memory_space<smem>>, %arg7: memref<2x32xf32, #tpu.memory_space<vmem>>, %arg8: memref<2x128xf32, #tpu.memory_space<vmem>>, %arg9: memref<2x8xf32, #tpu.memory_space<vmem>>) attributes {dimension_semantics = [#tpu.dimension_semantics<parallel>, #tpu.dimension_semantics<arbitrary>], iteration_bounds = array<i64: 1, 1>, scalar_prefetch = 0 : i64, scratch_operands = 1 : i64, tpu.core_type = #tpu.core_type<tc>, window_params = [{transform_indices = @transform_0, window_bounds = array<i64: 2, 8, 32>}, {transform_indices = @transform_1, window_bounds = array<i64: 32, 32>}, {transform_indices = @transform_2, window_bounds = array<i64: 1, 32>}, {transform_indices = @transform_3, window_bounds = array<i64: 1, 32>}, {transform_indices = @transform_4, window_bounds = array<i64: 1>}, {transform_indices = @transform_5, window_bounds = array<i64: 2, 32>}, {transform_indices = @transform_6, window_bounds = array<i64: 2, 128>}]} {
    %c0 = arith.constant 0 : index
    %c0_0 = arith.constant 0 : index
    %c0_1 = arith.constant 0 : index
    %0 = vector.load %arg2[%c0, %c0_0, %c0_1] : memref<2x8x32xf32, #tpu.memory_space<vmem>>, vector<2x8x32xf32>
    %1 = vector.shape_cast %0 : vector<2x8x32xf32> to vector<16x32xf32>
    %c0_2 = arith.constant 0 : index
    %c0_3 = arith.constant 0 : index
    %2 = vector.load %arg3[%c0_2, %c0_3] : memref<32x32xf32, #tpu.memory_space<vmem>>, vector<32x32xf32>
    %cst = arith.constant dense<0.000000e+00> : vector<16x32xf32>
    %3 = tpu.matmul %1, %2, %cst {dimension_numbers = #tpu.dot_dimension_numbers<[1], [0], [0], [1], [0, 0, 1, 1], [], []>} : vector<16x32xf32>, vector<32x32xf32>, vector<16x32xf32> -> vector<16x32xf32>
    %c0_4 = arith.constant 0 : index
    %c0_5 = arith.constant 0 : index
    %4 = vector.load %arg4[%c0_4, %c0_5] : memref<1x32xf32, #tpu.memory_space<vmem>>, vector<1x32xf32>
    %5 = vector.broadcast %4 : vector<1x32xf32> to vector<16x32xf32>
    %6 = arith.addf %3, %5 : vector<16x32xf32>
    %7 = math.tanh %6 : vector<16x32xf32>
    %c0_6 = arith.constant 0 : index
    %c0_7 = arith.constant 0 : index
    %8 = vector.load %arg5[%c0_6, %c0_7] : memref<1x32xf32, #tpu.memory_space<vmem>>, vector<1x32xf32>
    %9 = vector.shape_cast %7 : vector<16x32xf32> to vector<2x8x32xf32>
    %10 = vector.shape_cast %8 : vector<1x32xf32> to vector<1x1x32xf32>
    %11 = vector.broadcast %10 : vector<1x1x32xf32> to vector<2x8x32xf32>
    %12 = arith.mulf %9, %11 : vector<2x8x32xf32>
    %cst_8 = arith.constant dense<0.000000e+00> : vector<2x8xf32>
    %13 = vector.multi_reduction <add>, %12, %cst_8 [2] : vector<2x8x32xf32> to vector<2x8xf32>
    %c0_i32 = arith.constant 0 : i32
    %14 = arith.cmpi eq, %arg1, %c0_i32 : i32
    %15 = arith.extui %14 : i1 to i32
    %c0_i32_9 = arith.constant 0 : i32
    %16 = arith.cmpi ne, %15, %c0_i32_9 : i32
    scf.if %16 {
      %cst_16 = arith.constant 0.000000e+00 : f32
      %23 = vector.broadcast %cst_16 : f32 to vector<2x8xf32>
      %c0_17 = arith.constant 0 : index
      %c0_18 = arith.constant 0 : index
      %24 = vector.load %arg9[%c0_17, %c0_18] : memref<2x8xf32, #tpu.memory_space<vmem>>, vector<2x8xf32>
      tpu.vector_store %arg9[%c0_17, %c0_18], %23 {strides = array<i32>} : memref<2x8xf32, #tpu.memory_space<vmem>>, vector<2x8xf32>,
    } else {
    }
    %c0_10 = arith.constant 0 : index
    %c0_11 = arith.constant 0 : index
    %17 = vector.load %arg9[%c0_10, %c0_11] : memref<2x8xf32, #tpu.memory_space<vmem>>, vector<2x8xf32>
    %18 = arith.addf %17, %13 : vector<2x8xf32>
    %c0_12 = arith.constant 0 : index
    %c0_13 = arith.constant 0 : index
    %19 = vector.load %arg9[%c0_12, %c0_13] : memref<2x8xf32, #tpu.memory_space<vmem>>, vector<2x8xf32>
    tpu.vector_store %arg9[%c0_12, %c0_13], %18 {strides = array<i32>} : memref<2x8xf32, #tpu.memory_space<vmem>>, vector<2x8xf32>,
    %c0_i32_14 = arith.constant 0 : i32
    %20 = arith.cmpi eq, %arg1, %c0_i32_14 : i32
    %21 = arith.extui %20 : i1 to i32
    %c0_i32_15 = arith.constant 0 : i32
    %22 = arith.cmpi ne, %21, %c0_i32_15 : i32
    scf.if %22 {
      %c0_16 = arith.constant 0 : index
      %c0_17 = arith.constant 0 : index
      %23 = vector.load %arg9[%c0_16, %c0_17] : memref<2x8xf32, #tpu.memory_space<vmem>>, vector<2x8xf32>
      %c0_18 = arith.constant 0 : index
      %24 = memref.load %arg6[%c0_18] : memref<1xf32, #tpu.memory_space<smem>>
      %25 = vector.broadcast %24 : f32 to vector<2x8xf32>
      %26 = arith.addf %23, %25 : vector<2x8xf32>
      %cst_19 = arith.constant dense<0xFF800000> : vector<2xf32>
      %27 = vector.multi_reduction <maximumf>, %26, %cst_19 [1] : vector<2x8xf32> to vector<2xf32>
      %28 = vector.shape_cast %27 : vector<2xf32> to vector<2x1xf32>
      %29 = vector.broadcast %28 : vector<2x1xf32> to vector<2x8xf32>
      %30 = arith.subf %26, %29 : vector<2x8xf32>
      %31 = math.exp %30 : vector<2x8xf32>
      %cst_20 = arith.constant dense<0.000000e+00> : vector<2xf32>
      %32 = vector.multi_reduction <add>, %31, %cst_20 [1] : vector<2x8xf32> to vector<2xf32>
      %33 = vector.shape_cast %32 : vector<2xf32> to vector<2x1xf32>
      %34 = tpu.reciprocal %33 : vector<2x1xf32> -> vector<2x1xf32>
      %35 = vector.broadcast %34 : vector<2x1xf32> to vector<2x8xf32>
      %36 = arith.mulf %31, %35 : vector<2x8xf32>
      %cst_21 = arith.constant 0.000000e+00 : f32
      %37 = vector.broadcast %cst_21 : f32 to vector<2x120xf32>
      %38 = tpu.concatenate %36, %37 in 1 : vector<2x8xf32>, vector<2x120xf32> -> vector<2x128xf32>
      %c0_22 = arith.constant 0 : index
      %c0_23 = arith.constant 0 : index
      %39 = vector.load %arg8[%c0_22, %c0_23] : memref<2x128xf32, #tpu.memory_space<vmem>>, vector<2x128xf32>
      tpu.vector_store %arg8[%c0_22, %c0_23], %38 {strides = array<i32>} : memref<2x128xf32, #tpu.memory_space<vmem>>, vector<2x128xf32>,
      %40 = vector.shape_cast %36 : vector<2x8xf32> to vector<2x8x1xf32>
      %41 = vector.broadcast %40 : vector<2x8x1xf32> to vector<2x8x32xf32>
      %42 = arith.mulf %0, %41 : vector<2x8x32xf32>
      %cst_24 = arith.constant dense<0.000000e+00> : vector<2x32xf32>
      %43 = vector.multi_reduction <add>, %42, %cst_24 [1] : vector<2x8x32xf32> to vector<2x32xf32>
      %c0_25 = arith.constant 0 : index
      %c0_26 = arith.constant 0 : index
      %44 = vector.load %arg7[%c0_25, %c0_26] : memref<2x32xf32, #tpu.memory_space<vmem>>, vector<2x32xf32>
      tpu.vector_store %arg7[%c0_25, %c0_26], %43 {strides = array<i32>} : memref<2x32xf32, #tpu.memory_space<vmem>>, vector<2x32xf32>,
    } else {
    }
    return
  }
  func.func @transform_0(%arg0: i32, %arg1: i32) -> (i32, i32, i32) {
    %c0_i32 = arith.constant 0 : i32
    %c0_i32_0 = arith.constant 0 : i32
    %c0_i32_1 = arith.constant 0 : i32
    return %arg0, %c0_i32, %c0_i32_0 : i32, i32, i32
  }
  func.func @transform_1(%arg0: i32, %arg1: i32) -> (i32, i32) {
    %c0_i32 = arith.constant 0 : i32
    %c0_i32_0 = arith.constant 0 : i32
    return %c0_i32, %arg1 : i32, i32
  }
  func.func @transform_2(%arg0: i32, %arg1: i32) -> (i32, i32) {
    %c0_i32 = arith.constant 0 : i32
    %c0_i32_0 = arith.constant 0 : i32
    return %c0_i32, %arg1 : i32, i32
  }
  func.func @transform_3(%arg0: i32, %arg1: i32) -> (i32, i32) {
    %c0_i32 = arith.constant 0 : i32
    %c0_i32_0 = arith.constant 0 : i32
    return %c0_i32, %arg1 : i32, i32
  }
  func.func @transform_4(%arg0: i32, %arg1: i32) -> i32 {
    %c0_i32 = arith.constant 0 : i32
    %c0_i32_0 = arith.constant 0 : i32
    return %c0_i32 : i32
  }
  func.func @transform_5(%arg0: i32, %arg1: i32) -> (i32, i32) {
    %c0_i32 = arith.constant 0 : i32
    %c0_i32_0 = arith.constant 0 : i32
    return %arg0, %c0_i32 : i32, i32
  }
  func.func @transform_6(%arg0: i32, %arg1: i32) -> (i32, i32) {
    %c0_i32 = arith.constant 0 : i32
    %c0_i32_0 = arith.constant 0 : i32
    return %arg0, %c0_i32 : i32, i32
  }
}

</mosaic_0001>

<bundles_post_ra>
// kernel: tpu_custom_call.1
= control target key start
LH: loop header
LB: loop body
LE: loop exit
PB: predicated region body
PF: predicated region fallthrough
CT: control target
= control target key end

     0   :  { %13 = vsyncpa [#allocation5], 0  ;;  %s484_s0 = inlined_call_operand.hbm [shape: f32[2,8,32], index: 0, kind: input, shape index: {}]   ;;  %s485_s1 = inlined_call_operand.hbm [shape: f32[32,32], index: 1, kind: input, shape index: {}]   ;;  %s486_s2 = inlined_call_operand.vmem [shape: f32[1,32], index: 2, kind: input, shape index: {}]   ;;  %s487_s3 = inlined_call_operand.vmem [shape: f32[1,32], index: 3, kind: input, shape index: {}]   ;;  %s488_s4 = inlined_call_operand.<no memory space> [shape: f32[1], index: 4, kind: input, shape index: {}]   ;;  %s489_s5 = inlined_call_operand.hbm [shape: f32[2,32], index: 5, kind: output, shape index: {0}]   ;;  %s490_s6 = inlined_call_operand.hbm [shape: f32[2,128], index: 6, kind: output, shape index: {1}]  }
   0x1   :  { %14 = vsyncpa [#allocation8], 0 }
   0x2   :  { %15 = vsyncpa [#allocation6], 0 }
   0x3   :  { %16 = vsyncpa [#allocation11], 0  ;;  %s401_s21 = smov [#allocation4]  }
   0x4   :  { %s22_s22 = sshll.u32 %s401_s21, 4  ;;  %s23_s22 = int_to_ptr.vmem [resolvable:$true] %s22_s22 }
   0x5   :  { %s321_s23 = scalar_lea.vmem %s23_s22, 256  ;;  %p326_p1 = scmp.lt.s32.totalorder %s23_s22, %s23_s22 }
   0x6   :  { %p322_p0 = scmp.ne.s32.totalorder %s23_s22, %s321_s23  ;;  %p327_p2 = scmp.lt.s32.totalorder %s321_s23, %s321_s23 }
   0x8   :  { %p328_p3 = por %p327_p2, %p326_p1 }
   0xa   :  { %p329_p4 = pnand %p328_p3, %p322_p0 }
   0xc   :  { %332 = shalt.err (!%p329_p4)
}
   0xd   :  { %s402_s24 = smov 128   ;;  %s403_s25 = smov 8  }
   0xe   :  { %28 = dma.hbm_to_vmem [thread:$0]  %s484_s0, 256, %s23_s22, [#allocation5], %s402_s24, %s402_s24, %s403_s25  }
   0xf   :  { %s404_s28 = smov [#allocation7]  }
  0x10   :  { %s34_s29 = sshll.u32 %s404_s28, 4  ;;  %s35_s29 = int_to_ptr.vmem [resolvable:$true] %s34_s29 }
  0x11   :  { %s341_s30 = scalar_lea.vmem %s35_s29, 512  ;;  %p346_p6 = scmp.lt.s32.totalorder %s35_s29, %s35_s29 }
  0x12   :  { %p342_p5 = scmp.ne.s32.totalorder %s35_s29, %s341_s30  ;;  %p347_p7 = scmp.lt.s32.totalorder %s341_s30, %s341_s30 }
  0x14   :  { %p348_p8 = por %p347_p7, %p346_p6 }
  0x16   :  { %p349_p9 = pnand %p348_p8, %p342_p5 }
  0x18   :  { %352 = shalt.err (!%p349_p9)
}
  0x19   :  { %40 = dma.hbm_to_vmem [thread:$0]  %s485_s1, 512, %s35_s29, [#allocation8], %s402_s24, %s402_s24, %s403_s25  }
  0x1a   :  { %393 = dma.done.wait [#allocation5], 256  }
  0x1b   :  { %394 = vsyncadd [#allocation5], 4294967040 }
  0x1c   :  { %395 = dma.done.wait [#allocation8], 512  }
  0x1d   :  { %396 = vsyncadd [#allocation8], 4294966784  ;;  %vm66_vm0 = vcmask 261120   ;;  %v58_v0 = vld [vmem:[#allocation7 + $0x18] sm:$0xff]  ;;  %v57_v1 = vld [vmem:[#allocation7 + $0x10] sm:$0xff]  ;;  %vm169_vm1 = vcmask 58368   ;;  %v174_v19 = vlaneseq  ;;  %v195_v30 = vstv %s488_s4 }
  0x1e   :  { %287 = vmatprep.subr.mxu0 %v58_v0  ;;  %v449_v2 = vld [vmem:[#allocation4] sm:$0xff]  ;;  %v56_v3 = vld [vmem:[#allocation7 + $0x8] sm:$0xff]  ;;  %v55_v4 = vld [vmem:[#allocation7] sm:$0xff]  ;;  %v405_v18 = vmov 0.0   ;;  %vm184_vm2 = vcmask 1041409   ;;  %vm208_vm3 = vcmask 64512  }
  0x1f   :  { %288 = vmatpush3.msra.mxu0 %v58_v0  ;;  %295 = vmatprep.mubr.msk.f32.mxu0 %vm66_vm0, %v449_v2  ;;  %v453_v5 = vld [vmem:[#allocation4 + $0x8] sm:$0xff]  ;;  %v277_v6 = vld [vmem:[%s486_s2] ss:$0 sm:$0xff]  ;;  %170 = vst.msk [vmem:[#allocation2] sm:$0x3] %vm169_vm1, %v405_v18  ;;  %v175_v20 = vand.u32 127, %v174_v19 }
  0x20   :  { %289 = vmatprep.subr.mxu0 %v57_v1  ;;  %v280_v13 = vld [vmem:[%s487_s3] ss:$0 sm:$0xff]  ;;  %v177_v21 = vshrl.u32 %v174_v19, 7  ;;  %s406_s4 = smov [#allocation10]  }
  0x21   :  { %290 = vmatpush3.msra.mxu0 %v57_v1  ;;  %s263_s11 = sshll.u32 %s406_s4, 4  ;;  %s264_s11 = int_to_ptr.vmem [resolvable:$true] %s263_s11 }
  0x22   :  { %291 = vmatprep.subr.mxu0 %v56_v3  ;;  %v178_v23 = vsub.s32 %v175_v20, %v177_v21  ;;  %v220_v40 = vsub.s32 1, %v177_v21  ;;  %v213_v41 = vsub.s32 0, %v177_v21  ;;  %s353_s12 = scalar_lea.vmem %s264_s11, 32  ;;  %p358_p11 = scmp.lt.s32.totalorder %s264_s11, %s264_s11 }
  0x23   :  { %292 = vmatpush3.msra.mxu0 %v56_v3  ;;  %p354_p10 = scmp.ne.s32.totalorder %s264_s11, %s353_s12  ;;  %p359_p12 = scmp.lt.s32.totalorder %s353_s12, %s353_s12 }
  0x24   :  { %293 = vmatprep.subr.mxu0 %v55_v4 }
  0x25   :  { %294 = vmatpush3.msra.mxu0 %v55_v4  ;;  %p360_p13 = por %p359_p12, %p358_p11 }
  0x26   :  { %296 = vmatmul.mubr.msk.f32.vlgmr.msra.gmra.mxu0 %vm66_vm0, %v453_v5  ;;  %v171_v27 = vld [vmem:[#allocation2] sm:$0x3] }
  0x27   :  { %p361_p0 = pnand %p360_p13, %p354_p10 }
  0xe6   :  { %v297_v7 = vpop.f32.mrf.mxu0 }
  0xe7   :  { %v145_v8 = vadd.f32 %v297_v7, %v277_v6 }
  0xe8   :  { %v139_v9 = vpop.f32.mrf.mxu0 }
  0xe9   :  { %v140_v10 = vadd.f32 %v277_v6, %v139_v9  ;;  %305 = vtanh.f32 %v145_v8 }
  0xeb   :  { %307 = vtanh.f32 %v140_v10 }
  0xf6   :  { %v306_v11 = vpop.eup %305 }
  0xf7   :  { %v158_v16 = vmul.f32 %v306_v11, %v280_v13 }
  0xf8   :  { %v308_v12 = vpop.eup %307 }
  0xf9   :  { %v157_v14 = vmul.f32 %v308_v12, %v280_v13  ;;  %v162_v17 = vsel %vm66_vm0, %v158_v16, 0.0 }
  0xfb   :  { %v159_v15 = vsel %vm66_vm0, %v157_v14, 0.0 }
  0xfc   :  { %160 = vadd.xlane.f32.xlu0 %v159_v15 }
 0x100   :  { %163 = vadd.xlane.f32.xlu0 %v162_v17 }
 0x185   :  { %v161_v22 = vpop.xlane.xlu0 %160 }
 0x186   :  { %v179_v25 = vrot.slane %v161_v22, %v178_v23 }
 0x189   :  { %v164_v24 = vpop.xlane.xlu0 %163 }
 0x18a   :  { %v183_v26 = vrot.slane %v164_v24, %v178_v23 }
 0x18c   :  { %v185_v28 = vsel %vm184_vm2, %v183_v26, %v179_v25 }
 0x18d   :  { %v187_v29 = vadd.f32 %v185_v28, %v171_v27 }
 0x18f   :  { %189 = vst.msk [vmem:[#allocation2] sm:$0x3] %vm169_vm1, %v187_v29 }
 0x196   :  { %v193_v31 = vld [vmem:[#allocation2] sm:$0x3] }
 0x197   :  { %v196_v32 = vadd.f32 %v195_v30, %v193_v31 }
 0x199   :  { %v197_v33 = vsel %vm169_vm1, %v196_v32, -inf }
 0x19a   :  { %198 = vmax.xlane.f32.xlu1 %v197_v33 }
 0x223   :  { %v199_v34 = vpop.xlane.xlu1 %198 }
 0x224   :  { %v200_v35 = vsub.f32 %v196_v32, %v199_v34 }
 0x226   :  { %v201_v36 = vmul.f32 1.442695, %v200_v35 }
 0x228   :  { %309 = vpow2.f32 %v201_v36 }
 0x235   :  { %v310_v37 = vpop.eup %309 }
 0x236   :  { %v203_v38 = vsel %vm169_vm1, %v310_v37, 0.0 }
 0x237   :  { %204 = vadd.xlane.f32.xlu1 %v203_v38 }
 0x2c0   :  { %v205_v39 = vpop.xlane.xlu1 %204 }
 0x2c1   :  { %311 = vrcp.f32 %v205_v39 }
 0x2ce   :  { %v312_v42 = vpop.eup %311 }
 0x2cf   :  { %v207_v43 = vmul.f32 %v312_v42, %v310_v37 }
 0x2d1   :  { %v221_v44 = vrot.slane %v207_v43, %v220_v40  ;;  %v214_v45 = vrot.slane %v207_v43, %v213_v41  ;;  %v209_v46 = vsel %vm208_vm3, %v207_v43, 0.0 }
 0x2d2   :  { %210 = vst [vmem:[#allocation10] sm:$0x3] %v209_v46 }
 0x2d3   :  { %223 = vbcast.lane.b32.xlu1 %v221_v44, 256  ;;  %216 = vbcast.lane.b32.xlu0 %v214_v45, 256 }
 0x2d4   :  { %364 = shalt.err (!%p361_p0)
}
 0x2d5   :  { %266 = dma.vmem_to_hbm [thread:$0]  %s264_s11, 32, %s490_s6, [#allocation11]   ;;  %vm245_vm4 = vcmask 254976  }
 0x2d6   :  { %s407_s6 = smov [#allocation9]  }
 0x2d7   :  { %s253_s15 = sshll.u32 %s407_s6, 4  ;;  %s254_s15 = int_to_ptr.vmem [resolvable:$true] %s253_s15 }
 0x2d8   :  { %s373_s16 = scalar_lea.vmem %s254_s15, 32  ;;  %p378_p2 = scmp.lt.s32.totalorder %s254_s15, %s254_s15 }
 0x2d9   :  { %p374_p1 = scmp.ne.s32.totalorder %s254_s15, %s373_s16  ;;  %p379_p3 = scmp.lt.s32.totalorder %s373_s16, %s373_s16 }
 0x2db   :  { %p380_p4 = por %p379_p3, %p378_p2 }
 0x2dd   :  { %p381_p5 = pnand %p380_p4, %p374_p1 }
 0x345   :  { %v224_v47 = vpop.permute.xlu1 %223  ;;  %v217_v48 = vpop.permute.xlu0 %216 }
 0x346   :  { %v226_v49 = vmul.f32 %v224_v47, %v453_v5  ;;  %v225_v50 = vmul.f32 %v217_v48, %v449_v2 }
 0x348   :  { %v234_v51 = vsel %vm66_vm0, %v226_v49, 0.0  ;;  %v227_v52 = vsel %vm66_vm0, %v225_v50, 0.0 }
 0x349   :  { %v235_v53 = vrot.slane %v234_v51, 4  ;;  %v228_v54 = vrot.slane %v227_v52, 4 }
 0x34b   :  { %v236_v55 = vadd.f32 %v235_v53, %v234_v51  ;;  %v229_v56 = vadd.f32 %v228_v54, %v227_v52 }
 0x34d   :  { %v237_v57 = vrot.slane %v236_v55, 2  ;;  %v230_v58 = vrot.slane %v229_v56, 2 }
 0x34f   :  { %v238_v59 = vadd.f32 %v237_v57, %v236_v55  ;;  %v231_v60 = vadd.f32 %v230_v58, %v229_v56 }
 0x351   :  { %v239_v61 = vrot.slane %v238_v59, 1  ;;  %v232_v62 = vrot.slane %v231_v60, 1 }
 0x353   :  { %v240_v63 = vadd.f32 %v239_v61, %v238_v59  ;;  %v233_v0 = vadd.f32 %v232_v62, %v231_v60 }
 0x355   :  { %v243_v1 = vsel %vm184_vm2, %v240_v63, %v233_v0 }
 0x356   :  { %246 = vst.msk [vmem:[#allocation9] sm:$0x3] %vm245_vm4, %v243_v1 }
 0x357   :  { %384 = shalt.err (!%p381_p5)
}
 0x358   :  { %256 = dma.vmem_to_hbm [thread:$0]  %s254_s15, 32, %s489_s5, [#allocation6]  }
 0x359   :  { %397 = dma.done.wait [#allocation6], 32  }
 0x35a   :  { %398 = vsyncadd [#allocation6], 4294967264 }
 0x35b   :  { %399 = dma.done.wait [#allocation11], 32  }
 0x35c   :  { %400 = vsyncadd [#allocation11], 4294967264 }
 0x35d   :  { %273 = vsyncpa [#allocation5], 1 }
 0x35e   :  { %274 = vsyncpa [#allocation8], 1 }
 0x35f   :  { %275 = vsyncpa [#allocation6], 1 }
 0x360   :  { %276 = vsyncpa [#allocation11], 1 }

</bundles_post_ra>
